<compile_context>
chip_gen: v7x
topology: tpu7x:2x2x1
jax: 0.10.0
libtpu: 0.0.40
codegen_flags: <defaults>
</compile_context>

<pallas_src>
import functools

import jax
import jax.numpy as jnp
from jax.experimental import pallas as pl
from jax.experimental.pallas import tpu as pltpu


def _round_up(x, m):
    return ((x + m - 1) // m) * m


def _choose_n_tile(n):
    # >=256-wide tiles fill the 256-wide v6e/v7x MXU; 128 only for tiny N.
    if n >= 512:
        tn = 512
    elif n > 128:
        tn = 256
    else:
        tn = 128
    return tn, _round_up(n, tn)


def _choose_k_tile(k):
    # Only tile the reduction when it is large; typical DETR K stays whole.
    if k > 1024:
        tk = 512
        return tk, _round_up(k, tk)
    return k, k


# ---------------- kernels ----------------

def _linear_kernel_single_k(x_ref, w_ref, b_ref, o_ref):
    # Whole K in one block: no accumulator scratch, bias folded inline.
    o_ref[...] = (
        jnp.dot(x_ref[...], w_ref[...], preferred_element_type=jnp.float32)
        + b_ref[...]
    ).astype(o_ref.dtype)


def _linear_kernel_multi_k(x_ref, w_ref, b_ref, o_ref, acc_ref):
    # K is tiled: f32 accumulator resident across the K axis; bias folded
    # into the accumulator init (no separate zero-fill + epilogue add).
    k = pl.program_id(2)

    @pl.when(k == 0)
    def _():
        acc_ref[...] = jnp.broadcast_to(b_ref[...], acc_ref.shape)

    acc_ref[...] += jnp.dot(x_ref[...], w_ref[...],
                            preferred_element_type=jnp.float32)

    @pl.when(k == pl.num_programs(2) - 1)
    def _():
        o_ref[...] = acc_ref[...].astype(o_ref.dtype)


# ---------------- one-time parameter prep (hoisted out of forward) ---------

def prepare_linear_params(weight, bias, compute_dtype=None):
    """Cast + pad nn.Linear params once, at init time.

    weight: (out_dim, in_features) (PyTorch layout), bias: (out_dim,).
    Returns (weight_t_padded, bias_padded): W^T padded to (K_pad, N_pad) in
    compute_dtype (or weight dtype), and bias as (1, N_pad) float32.
    """
    out_dim, k = weight.shape
    w_dtype = compute_dtype if compute_dtype is not None else weight.dtype
    tn, n_pad = _choose_n_tile(out_dim)
    del tn
    tk, k_pad = _choose_k_tile(k)
    del tk

    w_t = jnp.asarray(weight).T.astype(w_dtype)
    if k_pad != k or n_pad != out_dim:
        w_t = jnp.pad(w_t, ((0, k_pad - k), (0, n_pad - out_dim)))

    b = jnp.asarray(bias).reshape(1, out_dim).astype(jnp.float32)
    if n_pad != out_dim:
        b = jnp.pad(b, ((0, 0), (0, n_pad - out_dim)))
    return w_t, b


# ---------------- forward ----------------

@functools.partial(jax.jit, static_argnames=("out_shape", "compute_dtype"))
def linear_to_2d(x, weight_t_padded, bias_padded, out_shape, compute_dtype=None):
    """x: (B, S, in_features); params from prepare_linear_params()."""
    B, S, K = x.shape
    H, W = out_shape
    N = H * W
    M = B * S

    out_dtype = x.dtype
    in_dtype = compute_dtype if compute_dtype is not None else x.dtype

    tn, N_pad = _choose_n_tile(N)
    tk, K_pad = _choose_k_tile(K)
    assert weight_t_padded.shape == (K_pad, N_pad), (
        "weight must be prepared with prepare_linear_params for this layer")
    assert bias_padded.shape == (1, N_pad)

    # Row tile: minimize M padding waste among {512,256,128,64}; small M
    # rounds up to the sublane packing (16 rows for 16-bit inputs, else 8).
    sub = 16 if jnp.dtype(in_dtype).itemsize == 2 else 8
    if M >= 64:
        tm = min((512, 256, 128, 64),
                 key=lambda t: (_round_up(M, t) - M, -t))
    else:
        tm = _round_up(M, sub)
    M_pad = _round_up(M, tm)

    k_tiles = K_pad // tk

    # Guarantee >= 2 steps on a parallel axis so both v7x TensorCores get work.
    if M_pad // tm == 1 and N_pad // tn == 1:
        if tn > 128:
            tn //= 2
        elif tm >= 2 * sub:
            tm //= 2

    # VMEM budget safety net + derived vmem limit (sized for v7x's 64 MiB).
    in_bytes = jnp.dtype(in_dtype).itemsize
    w_bytes = jnp.dtype(weight_t_padded.dtype).itemsize
    out_bytes = jnp.dtype(out_dtype).itemsize

    def _footprint(tm_, tn_, tk_):
        dbl = 2 * (tm_ * tk_ * in_bytes + tk_ * tn_ * w_bytes
                   + tm_ * tn_ * out_bytes + tn_ * 4)   # double-buffered
        return dbl + (tm_ * tn_ * 4 if k_tiles > 1 else 0)

    budget = 40 * 1024 * 1024
    while _footprint(tm, tn, tk) > budget and tn > 128:
        tn //= 2
    foot = _footprint(tm, tn, tk)
    vmem_limit = int(min(48 * 1024 * 1024,
                         _round_up(foot + 8 * 1024 * 1024, 1 << 20)))

    # Per-call padding only touches x (weight/bias were padded at init).
    x2d = x.reshape(M, K).astype(in_dtype)
    if M_pad != M or K_pad != K:
        x2d = jnp.pad(x2d, ((0, M_pad - M), (0, K_pad - K)))

    cost = pl.CostEstimate(
        flops=2 * M_pad * N_pad * K_pad,
        transcendentals=0,
        bytes_accessed=(M_pad * K_pad * in_bytes + K_pad * N_pad * w_bytes
                        + M_pad * N_pad * out_bytes),
    )

    m_tiles = M_pad // tm
    n_tiles = N_pad // tn

    if k_tiles == 1:
        # Grid (j, i) with i (M tiles) innermost: the (0, j) weight block is
        # constant across M, so Pallas fetches it from HBM exactly once.
        grid_spec = pltpu.PrefetchScalarGridSpec(
            num_scalar_prefetch=0,
            grid=(n_tiles, m_tiles),
            in_specs=[
                pl.BlockSpec((tm, tk), lambda j, i: (i, 0)),   # x rows (streamed)
                pl.BlockSpec((tk, tn), lambda j, i: (0, j)),   # weight (resident)
                pl.BlockSpec((1, tn), lambda j, i: (0, j)),    # bias
            ],
            out_specs=pl.BlockSpec((tm, tn), lambda j, i: (i, j)),
        )
        kernel = _linear_kernel_single_k
        dims = ("parallel", "parallel")
    else:
        grid_spec = pltpu.PrefetchScalarGridSpec(
            num_scalar_prefetch=0,
            grid=(n_tiles, m_tiles, k_tiles),
            in_specs=[
                pl.BlockSpec((tm, tk), lambda j, i, k: (i, k)),
                pl.BlockSpec((tk, tn), lambda j, i, k: (k, j)),
                pl.BlockSpec((1, tn), lambda j, i, k: (0, j)),
            ],
            out_specs=pl.BlockSpec((tm, tn), lambda j, i, k: (i, j)),
            scratch_shapes=[pltpu.VMEM((tm, tn), jnp.float32)],
        )
        kernel = _linear_kernel_multi_k
        dims = ("parallel", "parallel", "arbitrary")

    y2d = pl.pallas_call(
        kernel,
        out_shape=jax.ShapeDtypeStruct((M_pad, N_pad), out_dtype),
        grid_spec=grid_spec,
        compiler_params=pltpu.CompilerParams(
            dimension_semantics=dims,
            vmem_limit_bytes=vmem_limit,
        ),
        cost_estimate=cost,
    )(x2d, weight_t_padded, bias_padded)

    # Strip padding, then the free view to (B, S, H, W).
    return y2d[:M, :N].reshape(B, S, H, W)


def init_params(key, in_features, out_shape, dtype=jnp.float32):
    """Deterministic init matching nn.Linear shapes: W (out, in), b (out,)."""
    H, W = out_shape
    out_dim = H * W
    k_w, k_b = jax.random.split(key)
    bound = 1.0 / (in_features ** 0.5)  # PyTorch Linear default uniform bound
    weight = jax.random.uniform(k_w, (out_dim, in_features), dtype, -bound, bound)
    bias = jax.random.uniform(k_b, (out_dim,), dtype, -bound, bound)
    return weight, bias


if __name__ == "__main__":
    key = jax.random.PRNGKey(0)
    k_x, k_p = jax.random.split(key)

    B, S, in_features = 2, 8, 32
    out_shape = (4, 16)  # H, W  -> linear out dim = 64

    x = jax.random.normal(k_x, (B, S, in_features), jnp.float32)
    weight, bias = init_params(k_p, in_features, out_shape)

    # --- f32 path (exact check against the PyTorch-equivalent reference) ---
    w_f32, b_f32 = prepare_linear_params(weight, bias)          # one-time prep
    y = linear_to_2d(x, w_f32, b_f32, out_shape)
    y = jax.block_until_ready(y)

    y_ref = (x.reshape(B * S, in_features) @ weight.T + bias).reshape(
        B, S, out_shape[0], out_shape[1]
    )
    assert y.shape == (B, S, out_shape[0], out_shape[1])
    assert jnp.allclose(y, y_ref, atol=1e-5, rtol=1e-5)

    # --- bf16 input path (v6e/v7x MXU fast path; f32 accumulation) ---
    w_bf16, b_bf16 = prepare_linear_params(weight, bias,
                                           compute_dtype=jnp.bfloat16)
    y_bf16 = linear_to_2d(x, w_bf16, b_bf16, out_shape,
                          compute_dtype=jnp.bfloat16)
    y_bf16 = jax.block_until_ready(y_bf16)
    y_bf16_ref = (
        jnp.dot(x.reshape(B * S, in_features).astype(jnp.bfloat16),
                weight.T.astype(jnp.bfloat16),
                preferred_element_type=jnp.float32)
        + bias
    ).reshape(B, S, out_shape[0], out_shape[1])
    assert jnp.allclose(y_bf16, y_bf16_ref, atol=5e-2, rtol=5e-2)

    print("KERNEL_OK")
</pallas_src>

<mosaic_0001>
module attributes {stable_mosaic.version = 11 : i64} {
  func.func @_linear_kernel_single_k(%arg0: i32, %arg1: i32, %arg2: memref<8x32xf32, #tpu.memory_space<vmem>>, %arg3: memref<32x128xf32, #tpu.memory_space<vmem>>, %arg4: memref<1x128xf32, #tpu.memory_space<vmem>>, %arg5: memref<8x128xf32, #tpu.memory_space<vmem>>) attributes {dimension_semantics = [#tpu.dimension_semantics<parallel>, #tpu.dimension_semantics<parallel>], iteration_bounds = array<i64: 1, 2>, scalar_prefetch = 0 : i64, scratch_operands = 0 : i64, tpu.core_type = #tpu.core_type<tc>, window_params = [{transform_indices = @transform_0, window_bounds = array<i64: 8, 32>}, {transform_indices = @transform_1, window_bounds = array<i64: 32, 128>}, {transform_indices = @transform_2, window_bounds = array<i64: 1, 128>}, {transform_indices = @transform_3, window_bounds = array<i64: 8, 128>}]} {
    %c0 = arith.constant 0 : index
    %c0_0 = arith.constant 0 : index
    %0 = vector.load %arg2[%c0, %c0_0] : memref<8x32xf32, #tpu.memory_space<vmem>>, vector<8x32xf32>
    %c0_1 = arith.constant 0 : index
    %c0_2 = arith.constant 0 : index
    %1 = vector.load %arg3[%c0_1, %c0_2] : memref<32x128xf32, #tpu.memory_space<vmem>>, vector<32x128xf32>
    %cst = arith.constant dense<0.000000e+00> : vector<8x128xf32>
    %2 = tpu.matmul %0, %1, %cst {dimension_numbers = #tpu.dot_dimension_numbers<[1], [0], [0], [1], [0, 0, 1, 1], [], []>} : vector<8x32xf32>, vector<32x128xf32>, vector<8x128xf32> -> vector<8x128xf32>
    %c0_3 = arith.constant 0 : index
    %c0_4 = arith.constant 0 : index
    %3 = vector.load %arg4[%c0_3, %c0_4] : memref<1x128xf32, #tpu.memory_space<vmem>>, vector<1x128xf32>
    %4 = vector.broadcast %3 : vector<1x128xf32> to vector<8x128xf32>
    %5 = arith.addf %2, %4 : vector<8x128xf32>
    %c0_5 = arith.constant 0 : index
    %c0_6 = arith.constant 0 : index
    %6 = vector.load %arg5[%c0_5, %c0_6] : memref<8x128xf32, #tpu.memory_space<vmem>>, vector<8x128xf32>
    tpu.vector_store %arg5[%c0_5, %c0_6], %5 {strides = array<i32>} : memref<8x128xf32, #tpu.memory_space<vmem>>, vector<8x128xf32>,
    return
  }
  func.func @transform_0(%arg0: i32, %arg1: i32) -> (i32, i32) {
    %c0_i32 = arith.constant 0 : i32
    %c0_i32_0 = arith.constant 0 : i32
    return %arg1, %c0_i32 : i32, i32
  }
  func.func @transform_1(%arg0: i32, %arg1: i32) -> (i32, i32) {
    %c0_i32 = arith.constant 0 : i32
    %c0_i32_0 = arith.constant 0 : i32
    return %c0_i32, %arg0 : i32, i32
  }
  func.func @transform_2(%arg0: i32, %arg1: i32) -> (i32, i32) {
    %c0_i32 = arith.constant 0 : i32
    %c0_i32_0 = arith.constant 0 : i32
    return %c0_i32, %arg0 : i32, i32
  }
  func.func @transform_3(%arg0: i32, %arg1: i32) -> (i32, i32) {
    %c0_i32 = arith.constant 0 : i32
    return %arg1, %arg0 : i32, i32
  }
}

</mosaic_0001>

<bundles_post_ra>
// kernel: linear_to_2d.1
= control target key start
LH: loop header
LB: loop body
LE: loop exit
PB: predicated region body
PF: predicated region fallthrough
CT: control target
= control target key end

     0   :  { %8 = vsyncpa [#allocation3], 0  ;;  %s844_s0 = inlined_call_operand.hbm [shape: f32[16,32], index: 0, kind: input, shape index: {}]   ;;  %s845_s1 = inlined_call_operand.hbm [shape: f32[32,128], index: 1, kind: input, shape index: {}]   ;;  %s846_s2 = inlined_call_operand.vmem [shape: f32[1,128], index: 2, kind: input, shape index: {}]   ;;  %s847_s3 = inlined_call_operand.vmem [shape: f32[16,128], index: 3, kind: output, shape index: {}]  }
   0x1   :  { %10 = vsyncpa [#allocation3 + $0x1], 0 }
   0x2   :  { %11 = vsyncpa [#allocation5], 0  ;;  %s686_s12 = smov 0   ;;  %s688_s13 = smov 0  }
   0x3   :  { %s690_s14 = smov 0   ;;  %s692_s15 = smov 0  }
   0x4   :  { %s694_s16 = smov 0   ;;  %s696_s17 = smov 0  }
   0x5 LB: > { %s436_s18 = sadd.s32 4294967295, %s657_s17   ;;  %p49_p0 = scmp.ne.s32.totalorder %s641_s13, %s637_s12  ;;  %s657_s17 = sphi %s696_s17, %s17_s17   ;;  %s653_s16 = sphi %s694_s16, %s864_s16   ;;  %s649_s15 = sphi %s692_s15, %s863_s15   ;;  %s645_s14 = sphi %s690_s14, %s862_s14   ;;  %s641_s13 = sphi %s688_s13, %s861_s13   ;;  %s637_s12 = sphi %s686_s12, %s860_s12  }
   0x6   : > { %p716_p1 = scmp.eq.s32.totalorder %s436_s18, 0  ;;  %p438_p2 = scmp.ge.s32.totalorder %s657_s17, 1 }
   0x7   : > { %p140_p3 = scmp.lt.s32.totalorder %s657_s17, 3  ;;  %s659_s22 = smov [#allocation4]  }
   0x8   : > { %s852_s19 = scalar_select %p716_p1, 1, 0 }
   0x9   : > { %p724_p4 = por %p716_p1, %p49_p0  ;;  %p728_p5 = pnand %p438_p2, %p140_p3 }
   0xa   : > { %s154_s23 = sshll.u32 %s659_s22, 4  ;;  %s26_s25 = sadd.s32 1, %s653_s16  ;;  %s155_s23 = int_to_ptr.vmem [resolvable:$true] %s154_s23 }
   0xb   : > { %s853_s20 = scalar_select %p724_p4, 1, 0 }
   0xc   : > { %s854_s21 = scalar_select %p728_p5, 1, 0 }
   0xd   : > { %p480_p6 = pneg %p728_p5  ;;  %s545_s28 = scalar_lea.hbm %s845_s1, 512 }
   0xe   : > { %p546_p8 = scmp.ne.s32.totalorder %s845_s1, %s545_s28  ;;  %p552_p12 = scmp.lt.u32.totalorder %s545_s28, %s845_s1 }
   0xf   : > { %p736_p7 = pnand %p480_p6, %p716_p1 }
  0x11   : > { %p547_p9 = pneg %p736_p7 }
  0x13   : > { %p548_p10 = pnand %p547_p9, %p546_p8 }
  0x15   : > { %p549_p11 = pneg %p548_p10 }
  0x17   : > { %p554_p13 = pnand %p552_p12, %p549_p11 }
  0x19   : > { %557 = shalt.err (!%p554_p13)
}
  0x1a   : > { %s558_s6 = scalar_lea.vmem %s155_s23, 512  ;;  %p566_p6 = scmp.lt.s32.totalorder %s155_s23, %s155_s23 }
  0x1b   : > { %p559_p0 = scmp.ne.s32.totalorder %s155_s23, %s558_s6  ;;  %p567_p1 = scmp.lt.s32.totalorder %s558_s6, %s558_s6 }
  0x1d   : > { %p561_p2 = pnand %p559_p0, %p547_p9  ;;  %p568_p4 = por %p567_p1, %p566_p6 }
  0x1f   : > { %p562_p3 = pneg %p561_p2 }
  0x21   : > { %p569_p5 = pnand %p568_p4, %p562_p3 }
  0x23   : > { %572 = shalt.err (!%p569_p5)
}
  0x24   : > { %s660_s7 = smov 128   ;;  %s661_s8 = smov 8  }
  0x25   : > { %483 = dma.hbm_to_vmem [thread:$0]  (!%p736_p7), %s845_s1, 512, %s155_s23, [#allocation5], %s660_s7, %s660_s7, %s661_s8  }
  0x26   : > { %p27_p1 = scmp.ge.s32.totalorder %s26_s25, 2  ;;  %s36_s11 = sadd.s32 1, %s645_s14 }
  0x27   : > { %p43_p4 = scmp.ne.s32.totalorder %s645_s14, %s641_s13  ;;  %p44_p5 = scmp.eq.s32.totalorder %s657_s17, 0 }
  0x28   : > { %s866_s25 = smov (%p27_p1, %s26_s25), 0  ;;  %p489_p9 = scmp.lt.s32.totalorder %s657_s17, 2 }
  0x29   : > { %p45_p8 = por %p44_p5, %p43_p4  ;;  %s33_s12 = ssub.s32 %s653_s16, %s866_s25 }
  0x2a   : > { %s174_s18 = sand.u32 1, %s645_s14   ;;  %p34_p10 = scmp.eq.s32.totalorder %s33_s12, 0 }
  0x2b   : > { %s442_s22 = sshll.u32 %s174_s18, 3  ;;  %s443_s26 = sshll.u32 %s653_s16, 7 }
  0x2c   : > { %s769_s27 = scalar_select %p34_p10, %s645_s14, %s36_s11  }
  0x2d   : > { %s774_s23 = scalar_lea.hbm %s844_s0, %s443_s26  ;;  %s178_s29 = scalar_lea.vmem [#allocation2], %s442_s22 }
  0x2e   : > { %s185_s30 = sshll.u32 %s178_s29, 4  ;;  %p776_p7 = pnand %p489_p9, %p45_p8  ;;  %s780_s30 = int_to_ptr.vmem [resolvable:$true] %s185_s30 }
  0x2f   : > { %s175_s5 = scalar_lea.sflag [#allocation3], %s174_s18  ;;  %s573_s6 = scalar_lea.hbm %s774_s23, 128 }
  0x30   : > { %p574_p11 = scmp.ne.s32.totalorder %s774_s23, %s573_s6  ;;  %p575_p12 = pneg %p776_p7 }
  0x31   : > { %s578_s9 = scalar_lea.hbm %s844_s0, 256  ;;  %p579_p2 = scmp.lt.u32.totalorder %s774_s23, %s844_s0 }
  0x32   : > { %p576_p13 = pnand %p575_p12, %p574_p11  ;;  %p580_p3 = scmp.lt.u32.totalorder %s578_s9, %s573_s6 }
  0x33   : > { %p582_p1 = scmp.lt.u32.totalorder %s573_s6, %s774_s23 }
  0x34   : > { %p577_p0 = pneg %p576_p13  ;;  %p581_p6 = por %p580_p3, %p579_p2 }
  0x36   : > { %p583_p4 = por %p582_p1, %p581_p6 }
  0x38   : > { %p584_p5 = pnand %p583_p4, %p577_p0 }
  0x3a   : > { %587 = shalt.err (!%p584_p5)
}
  0x3b   : > { %s588_s12 = scalar_lea.vmem %s780_s30, 128  ;;  %s662_s18 = smov [#allocation2]  }
  0x3c   : > { %p589_p8 = scmp.ne.s32.totalorder %s780_s30, %s588_s12  ;;  %s593_s22 = sshll.u32 %s662_s18, 4  ;;  %s594_s22 = int_to_ptr.vmem [resolvable:$false] %s593_s22 }
  0x3d   : > { %s595_s26 = scalar_lea.vmem %s594_s22, 256  ;;  %p596_p11 = scmp.lt.s32.totalorder %s780_s30, %s594_s22 }
  0x3e   : > { %p591_p9 = pnand %p589_p8, %p575_p12  ;;  %p597_p13 = scmp.lt.s32.totalorder %s595_s26, %s588_s12 }
  0x40   : > { %p592_p10 = pneg %p591_p9  ;;  %p598_p2 = por %p597_p13, %p596_p11 }
  0x42   : > { %p599_p3 = pnand %p598_p2, %p592_p10 }
  0x44   : > { %602 = shalt.err (!%p599_p3)
}
  0x45   : > { %487 = dma.hbm_to_vmem [thread:$0]  (!%p776_p7), %s774_s23, 128, %s780_s30, %s175_s5  }
  0x46   : > { %p857_p0 = scmp.ne.s32.totalorder %s854_s21, 0 }
  0x47   : > { %s196_s24 = sand.u32 (!%p857_p0), 1, %s641_s13   ;;  %p858_p12 = scmp.ne.s32.totalorder (!%p857_p0), %s853_s20, 0 }
  0x48   : > { %194 = sbr.rel (%p857_p0) target bundleno = 309 (0x135), region = 32  ;;  %s445_s28 = sshll.u32 (!%p857_p0), %s196_s24, 3 }
  0x49   : > { %s197_s29 = scalar_lea.sflag (!%p857_p0), [#allocation3], %s196_s24  ;;  %s200_s6 = scalar_lea.vmem (!%p857_p0), [#allocation2], %s445_s28 }
  0x4f   : > { %628 = dma.done.wait (%p858_p12), %s197_s29, 128  }
  0x50   : > { %630 = vsyncadd (%p858_p12), %s197_s29, 4294967168  ;;  %p859_p6 = scmp.ne.s32.totalorder %s852_s19, 0 }
  0x52   : > { %632 = dma.done.wait (%p859_p6), [#allocation5], 512  }
  0x53   : > { %634 = vsyncadd (%p859_p6), [#allocation5], 4294966784  ;;  %v663_v0 = vmov 0.0|0.0   ;;  %vm664_vm0 = vmmov 0   ;;  %v665_v1 = vmov 0.0   ;;  %v243_v2 = vld [vmem:[#allocation4] sm:$0xff] }
  0x54   : > { %468 = vmatprep.subr.bf16.mxu0 %v663_v0  ;;  %465 = vmatprep.mubr.msk.f32.mxu0 %vm664_vm0, %v665_v1  ;;  %v244_v3 = vld [vmem:[#allocation4 + $0x8] sm:$0xff]  ;;  %v245_v4 = vld [vmem:[#allocation4 + $0x10] sm:$0xff]  ;;  %v246_v6 = vld [vmem:[#allocation4 + $0x18] sm:$0xff]  ;;  %vm254_vm1 = vcmask 261120   ;;  %p235_p7 = scmp.lt.s32.totalorder %s649_s15, 1 }
  0x55   : > { %v469_v5 = vpack.c.bf16 %v244_v3, %v243_v2  ;;  %v472_v7 = vpack.c.bf16 %v246_v6, %v245_v4  ;;  %v242_v8 = vld [vmem:[%s200_s6] sm:$0xff] }
  0x56   : > { %s868_s15 = smov (!%p235_p7, %s649_s15), 1  ;;  %v448_v9 = vld [vmem:[%s846_s2] ss:$0 sm:$0xff] }
  0x57   : > { %470 = vmatpush3.bf16.msra.mxu0 %v469_v5  ;;  %s447_s19 = sshll.u32 %s868_s15, 3 }
  0x58   : > { %471 = vmatprep.subr.bf16.mxu0 %v663_v0  ;;  %s241_s4 = scalar_lea.vmem %s847_s3, %s447_s19 }
  0x5b   : > { %473 = vmatpush3.bf16.msra.mxu0 %v472_v7 }
  0x5e   : > { %466 = vmatmul.mubr.msk.f32.vlgmr.msra.gmra.mrb[0].mxu0 %vm254_vm1, %v242_v8 }
 0x131   : > { %v324_v10 = vpop.f32.mrb[0].mxu0 }
 0x132   : > { %v325_v11 = vadd.f32 %v448_v9, %v324_v10  ;;  %v467_v12 = vpop.f32.mrb[1].mxu0 }
 0x134   : > { %328 = vst [vmem:[%s241_s4] sm:$0xff] %v325_v11 }
 0x135 PF: > { %s17_s17 = sadd.s32 1, %s657_s17   ;;  %s860_s12 = smov %s641_s13 }
 0x136   : > { %p14_p1 = scmp.ge.s32.totalorder %s17_s17, 4   ;;  %s861_s13 = smov %s645_s14 }
 0x137   : > { %s862_s14 = smov %s769_s27  ;;  %s863_s15 = smov %s653_s16 }
 0x138   : > { %s864_s16 = smov %s866_s25  ;;  %16 = sbr.rel (!%p14_p1) target bundleno = 5 (0x5), region = 80 }
 0x13f   :  { %354 = vsyncpa [#allocation3], 1 }
 0x140   :  { %356 = vsyncpa [#allocation3 + $0x1], 1 }
 0x141   :  { %357 = vsyncpa [#allocation5], 1 }

</bundles_post_ra>
